<compile_context>
chip_gen: v5e
topology: v5e:2x2
jax: 0.10.0
libtpu: 0.0.40
codegen_flags: <defaults>
</compile_context>

<pallas_src>
import functools

import jax
import jax.numpy as jnp
from jax.experimental import pallas as pl
from jax.experimental.pallas import tpu as pltpu

D_IN = 20
D_HID = 20
D_OUT = 2
_LANE = 128


def _round_up(x: int, m: int) -> int:
    return ((x + m - 1) // m) * m


def _cdiv(a: int, b: int) -> int:
    return (a + b - 1) // b


def _choose_tiling(batch: int, tb_req: int):
    """Pick (tile, grid, padded_batch) for the lane-dense (features, batch) layout."""
    b128 = _round_up(max(batch, 1), _LANE)           # pad batch to lane granule only
    tb = _round_up(max(_LANE, min(tb_req, b128)), _LANE)
    grid = _cdiv(b128, tb)
    # v7x has 2 TensorCores: give the "parallel" batch axis >= 2 grid steps when
    # there is enough work to split (negligible cost on 1-TC v5e/v6e at this size).
    if grid < 2 and b128 >= 8 * _LANE:
        grid = 2
    tile = _round_up(_cdiv(b128, grid), _LANE)       # rebalance -> small tail waste
    b_pad = grid * tile
    return tile, grid, b_pad


def _net_kernel(xt_ref, w1_ref, b1_ref, w2d_ref, b2d_ref, o_ref):
    """One batch tile, feature-major / lane-dense.

    xt:  (20, TB)  activations, batch on lanes (lane-dense)
    w1:  (20, 20)  PyTorch (out_features, in_features) orientation
    b1:  (20, 1)
    w2d: (20, 1)   w2[0,:] - w2[1,:] as a column
    b2d: (1,)      b2[0] - b2[1], SMEM scalar
    o:   (1, TB)   p(class 0), lane-dense
    """
    # fc1 + ReLU:  h^T = W1 @ x^T + b1   (f32 accumulation on the MXU)
    h = jnp.dot(w1_ref[...], xt_ref[...], preferred_element_type=jnp.float32)
    h = jnp.maximum(h + b1_ref[...], 0.0)
    # fc2 folded to the 2-class logit difference:
    #   z = (w2_0 - w2_1) . h + (b2_0 - b2_1)      (VPU multiply + sublane reduce)
    z = jnp.sum(h * w2d_ref[...], axis=0, keepdims=True) + b2d_ref[0]
    # softmax over 2 classes == sigmoid of the logit difference (EUP op, exact).
    o_ref[...] = jax.nn.sigmoid(z).astype(o_ref.dtype)


@functools.partial(jax.jit, static_argnames=("tb",))
def net_forward(x, w1, b1, w2, b2, *, tb: int = 32768):
    """Forward pass of `Net`.

    x: (B, 20). Weights use PyTorch nn.Linear layout: w1 (20, 20), w2 (2, 20),
    biases any shape reshapeable to (20,) / (2,). Returns (B, 2) float32 probs.
    """
    batch, d_in = x.shape
    assert d_in == D_IN and w1.shape == (D_HID, D_IN) and w2.shape == (D_OUT, D_HID)

    f32 = jnp.float32
    w1f = w1.astype(f32)
    b1c = jnp.reshape(b1, (-1,)).astype(f32)[:, None]          # (20, 1)
    w2f = w2.astype(f32)
    b2v = jnp.reshape(b2, (-1,)).astype(f32)                   # (2,)
    w2d = (w2f[0, :] - w2f[1, :])[:, None]                     # (20, 1)
    b2d = (b2v[0] - b2v[1]).reshape(1)                         # (1,) -> SMEM

    tile, grid, b_pad = _choose_tiling(batch, tb)

    # Lane-dense, feature-major activations: batch lives on the 128-wide lanes.
    xt = jnp.pad(x.astype(f32), ((0, b_pad - batch), (0, 0))).T   # (20, b_pad)

    cost = pl.CostEstimate(
        flops=2 * b_pad * (D_IN * D_HID + D_HID),
        transcendentals=b_pad,
        bytes_accessed=4 * (b_pad * (D_IN + 1) + D_IN * D_HID + 2 * D_HID + 1),
    )

    p0 = pl.pallas_call(
        _net_kernel,
        out_shape=jax.ShapeDtypeStruct((1, b_pad), f32),
        grid=(grid,),
        in_specs=[
            pl.BlockSpec((D_IN, tile), lambda i: (0, i)),          # x^T: batch-tiled
            pl.BlockSpec((D_HID, D_IN), lambda i: (0, 0)),         # w1: resident
            pl.BlockSpec((D_HID, 1), lambda i: (0, 0)),            # b1: resident
            pl.BlockSpec((D_HID, 1), lambda i: (0, 0)),            # w2 diff: resident
            pl.BlockSpec(memory_space=pltpu.MemorySpace.SMEM),     # b2 diff: SMEM scalar
        ],
        out_specs=pl.BlockSpec((1, tile), lambda i: (0, i)),       # lane-dense p0
        compiler_params=pltpu.CompilerParams(
            dimension_semantics=("parallel",),
            vmem_limit_bytes=48 * 1024 * 1024,
        ),
        cost_estimate=cost,
    )(xt, w1f, b1c, w2d, b2d)

    p0 = p0[0, :batch]
    # Rebuild the 2-column softmax output in the wrapper (trivial fused XLA op;
    # keeps the kernel's store lane-dense).
    return jnp.stack([p0, 1.0 - p0], axis=1)


def init_params(key):
    # Mimic PyTorch default Linear init: U(-1/sqrt(fan_in), 1/sqrt(fan_in)),
    # deterministic from a JAX PRNG key (synthetic weights, no checkpoint).
    k1, k2, k3, k4 = jax.random.split(key, 4)
    bound = 1.0 / jnp.sqrt(jnp.float32(D_IN))
    w1 = jax.random.uniform(k1, (D_HID, D_IN), jnp.float32, -bound, bound)   # (out, in)
    b1 = jax.random.uniform(k2, (D_HID,), jnp.float32, -bound, bound)
    w2 = jax.random.uniform(k3, (D_OUT, D_HID), jnp.float32, -bound, bound)  # (out, in)
    b2 = jax.random.uniform(k4, (D_OUT,), jnp.float32, -bound, bound)
    return w1, b1, w2, b2


def _reference(x, w1, b1, w2, b2):
    h = jnp.maximum(x @ w1.T + b1[None, :], 0.0)
    return jax.nn.softmax(h @ w2.T + b2[None, :], axis=1)


if __name__ == "__main__":
    key = jax.random.PRNGKey(0)
    kx1, kx2, kx3, kp = jax.random.split(key, 4)
    w1, b1, w2, b2 = init_params(kp)

    def check(xb, **kw):
        out = jax.block_until_ready(net_forward(xb, w1, b1, w2, b2, **kw))
        ref = _reference(xb, w1, b1, w2, b2)
        assert out.shape == ref.shape
        err = float(jnp.max(jnp.abs(out - ref)))
        assert jnp.allclose(out, ref, atol=2e-5, rtol=2e-5), err
        assert jnp.allclose(jnp.sum(out, axis=1), 1.0, atol=1e-5)

    # Small batch (single grid step).
    check(jax.random.normal(kx1, (8, D_IN), jnp.float32))
    # Batch not a multiple of the lane width (exercises the padding path).
    check(jax.random.normal(kx2, (10, D_IN), jnp.float32))
    # Multi-step grid + padded tail rows (exercises pipelining and the tile cap).
    check(jax.random.normal(kx3, (300, D_IN), jnp.float32), tb=256)

    print("KERNEL_OK")
</pallas_src>

<mosaic_0001>
module attributes {stable_mosaic.version = 11 : i64} {
  func.func @_net_kernel(%arg0: i32, %arg1: memref<20x128xf32, #tpu.memory_space<vmem>>, %arg2: memref<20x20xf32, #tpu.memory_space<vmem>>, %arg3: memref<20x1xf32, #tpu.memory_space<vmem>>, %arg4: memref<20x1xf32, #tpu.memory_space<vmem>>, %arg5: memref<1xf32, #tpu.memory_space<smem>>, %arg6: memref<1x128xf32, #tpu.memory_space<vmem>>) attributes {dimension_semantics = [#tpu.dimension_semantics<parallel>], iteration_bounds = array<i64: 1>, scalar_prefetch = 0 : i64, scratch_operands = 0 : i64, tpu.core_type = #tpu.core_type<tc>, window_params = [{transform_indices = @transform_0, window_bounds = array<i64: 20, 128>}, {pipeline_mode = #tpu.pipeline_mode<synchronous>, transform_indices = @transform_1, window_bounds = array<i64: 20, 20>}, {pipeline_mode = #tpu.pipeline_mode<synchronous>, transform_indices = @transform_2, window_bounds = array<i64: 20, 1>}, {pipeline_mode = #tpu.pipeline_mode<synchronous>, transform_indices = @transform_3, window_bounds = array<i64: 20, 1>}, {transform_indices = @transform_4, window_bounds = array<i64: 1>}, {transform_indices = @transform_5, window_bounds = array<i64: 1, 128>}]} {
    %c0 = arith.constant 0 : index
    %c0_0 = arith.constant 0 : index
    %0 = vector.load %arg2[%c0, %c0_0] : memref<20x20xf32, #tpu.memory_space<vmem>>, vector<20x20xf32>
    %c0_1 = arith.constant 0 : index
    %c0_2 = arith.constant 0 : index
    %1 = vector.load %arg1[%c0_1, %c0_2] : memref<20x128xf32, #tpu.memory_space<vmem>>, vector<20x128xf32>
    %cst = arith.constant dense<0.000000e+00> : vector<20x128xf32>
    %2 = tpu.matmul %0, %1, %cst {dimension_numbers = #tpu.dot_dimension_numbers<[1], [0], [0], [1], [0, 0, 1, 1], [], []>} : vector<20x20xf32>, vector<20x128xf32>, vector<20x128xf32> -> vector<20x128xf32>
    %c0_3 = arith.constant 0 : index
    %c0_4 = arith.constant 0 : index
    %3 = vector.load %arg3[%c0_3, %c0_4] : memref<20x1xf32, #tpu.memory_space<vmem>>, vector<20x1xf32>
    %4 = vector.broadcast %3 : vector<20x1xf32> to vector<20x128xf32>
    %5 = arith.addf %2, %4 : vector<20x128xf32>
    %cst_5 = arith.constant 0.000000e+00 : f32
    %6 = vector.broadcast %cst_5 : f32 to vector<20x128xf32>
    %7 = arith.maximumf %5, %6 : vector<20x128xf32>
    %c0_6 = arith.constant 0 : index
    %c0_7 = arith.constant 0 : index
    %8 = vector.load %arg4[%c0_6, %c0_7] : memref<20x1xf32, #tpu.memory_space<vmem>>, vector<20x1xf32>
    %9 = vector.broadcast %8 : vector<20x1xf32> to vector<20x128xf32>
    %10 = arith.mulf %7, %9 : vector<20x128xf32>
    %cst_8 = arith.constant dense<0.000000e+00> : vector<128xf32>
    %11 = vector.multi_reduction <add>, %10, %cst_8 [0] : vector<20x128xf32> to vector<128xf32>
    %12 = vector.shape_cast %11 : vector<128xf32> to vector<1x128xf32>
    %c0_9 = arith.constant 0 : index
    %13 = memref.load %arg5[%c0_9] : memref<1xf32, #tpu.memory_space<smem>>
    %14 = vector.broadcast %13 : f32 to vector<1x128xf32>
    %15 = arith.addf %12, %14 : vector<1x128xf32>
    %16 = arith.negf %15 : vector<1x128xf32>
    %17 = math.exp %16 : vector<1x128xf32>
    %cst_10 = arith.constant 1.000000e+00 : f32
    %18 = vector.broadcast %cst_10 : f32 to vector<1x128xf32>
    %19 = arith.addf %18, %17 : vector<1x128xf32>
    %20 = arith.divf %18, %19 : vector<1x128xf32>
    %c0_11 = arith.constant 0 : index
    %c0_12 = arith.constant 0 : index
    %21 = vector.load %arg6[%c0_11, %c0_12] : memref<1x128xf32, #tpu.memory_space<vmem>>, vector<1x128xf32>
    tpu.vector_store %arg6[%c0_11, %c0_12], %20 {strides = array<i32>} : memref<1x128xf32, #tpu.memory_space<vmem>>, vector<1x128xf32>,
    return
  }
  func.func @transform_0(%arg0: i32) -> (i32, i32) {
    %c0_i32 = arith.constant 0 : i32
    %c0_i32_0 = arith.constant 0 : i32
    return %c0_i32, %arg0 : i32, i32
  }
  func.func @transform_1(%arg0: i32) -> (i32, i32) {
    %c0_i32 = arith.constant 0 : i32
    %c0_i32_0 = arith.constant 0 : i32
    %c0_i32_1 = arith.constant 0 : i32
    return %c0_i32, %c0_i32_0 : i32, i32
  }
  func.func @transform_2(%arg0: i32) -> (i32, i32) {
    %c0_i32 = arith.constant 0 : i32
    %c0_i32_0 = arith.constant 0 : i32
    %c0_i32_1 = arith.constant 0 : i32
    return %c0_i32, %c0_i32_0 : i32, i32
  }
  func.func @transform_3(%arg0: i32) -> (i32, i32) {
    %c0_i32 = arith.constant 0 : i32
    %c0_i32_0 = arith.constant 0 : i32
    %c0_i32_1 = arith.constant 0 : i32
    return %c0_i32, %c0_i32_0 : i32, i32
  }
  func.func @transform_4(%arg0: i32) -> i32 {
    %c0_i32 = arith.constant 0 : i32
    %c0_i32_0 = arith.constant 0 : i32
    return %c0_i32 : i32
  }
  func.func @transform_5(%arg0: i32) -> (i32, i32) {
    %c0_i32 = arith.constant 0 : i32
    %c0_i32_0 = arith.constant 0 : i32
    return %c0_i32, %arg0 : i32, i32
  }
}

</mosaic_0001>

<bundles_post_ra>
// kernel: net_forward.1
= control target key start
LH: loop header
LB: loop body
LE: loop exit
PB: predicated region body
PF: predicated region fallthrough
CT: control target
= control target key end

     0   :  { %vm55_vm0 = vcmask 1043456   ;;  %v164_v2 = vmov 0   ;;  %vm45_vm1 = vcmask 162816   ;;  %s241_s0 = inlined_call_operand.vmem [shape: f32[20,128], index: 0, kind: input, shape index: {}]   ;;  %s242_s2 = inlined_call_operand.vmem [shape: f32[20,1], index: 2, kind: input, shape index: {}]   ;;  %s243_s1 = inlined_call_operand.vmem [shape: f32[20,20], index: 1, kind: input, shape index: {}]   ;;  %s244_s3 = inlined_call_operand.vmem [shape: f32[20,1], index: 3, kind: input, shape index: {}]   ;;  %s245_s4 = inlined_call_operand.<no memory space> [shape: f32[1], index: 4, kind: input, shape index: {}]   ;;  %s246_s5 = inlined_call_operand.vmem [shape: f32[1,128], index: 5, kind: output, shape index: {}]  }
   0x1   :  { %v26_v0 = vld [vmem:[%s241_s0 + $0x10] sm:$0xf]  ;;  %v25_v1 = vld [vmem:[%s241_s0 + $0x8] sm:$0xff]  ;;  %157 = vset.pattern.permute.xlu0 %v164_v2  ;;  %158 = vset.pattern.permute.xlu1 %v164_v2  ;;  %v27_v3 = vld [vmem:[%s242_s2] sm:$0xff]  ;;  %v119_v39 = vstv %s245_s4 }
   0x2   :  { %145 = vmatpush.msk.msra.mxu0 %vm55_vm0, %v26_v0  ;;  %150 = vmatpush.msk.msra.mxu1 %vm55_vm0, %v26_v0  ;;  %v24_v4 = vld [vmem:[%s241_s0] sm:$0xff]  ;;  %v29_v5 = vld [vmem:[%s242_s2 + $0x10] sm:$0xf]  ;;  %v22_v7 = vld [vmem:[%s243_s1 + $0x8] sm:$0xff] }
   0x3   :  { %151 = vmatpush.msk.msra.mxu2 %vm55_vm0, %v26_v0  ;;  %32 = vperm.xlu0 %157, %v27_v3   ;;  %v21_v6 = vld [vmem:[%s243_s1] sm:$0xff]  ;;  %v23_v8 = vld [vmem:[%s243_s1 + $0x10] sm:$0xf]  ;;  %v89_v9 = vld [vmem:[%s244_s3 + $0x8] sm:$0xff] }
   0x4   :  { %73 = vmatpush.msra.mxu0 %v25_v1  ;;  %152 = vmatpush.msra.mxu1 %v25_v1  ;;  %v28_v10 = vld [vmem:[%s242_s2 + $0x8] sm:$0xff]  ;;  %v88_v11 = vld [vmem:[%s244_s3] sm:$0xff]  ;;  %v90_v12 = vld [vmem:[%s244_s3 + $0x10] sm:$0xf] }
   0x5   :  { %153 = vmatpush.msra.mxu2 %v25_v1  ;;  %42 = vperm.xlu1 %158, %v29_v5  }
   0x6   :  { %74 = vmatpush.msra.mxu0 %v24_v4  ;;  %154 = vmatpush.msra.mxu1 %v24_v4 }
   0x7   :  { %155 = vmatpush.msra.mxu2 %v24_v4  ;;  %146 = vmatmul.msk.f32.vlgmr.msra.gmra.mxu0 %vm45_vm1, %v21_v6 }
   0x8   :  { %147 = vmatmul.msk.f32.vlgmr.msra.gmra.mxu1 %vm45_vm1, %v22_v7  ;;  %148 = vmatmul.msk.f32.vlgmr.msra.gmra.mxu2 %vm45_vm1, %v23_v8 }
   0x9   :  { %159 = vset.pattern.permute.xlu2 %v164_v2 }
   0xa   :  { %98 = vperm.xlu2 %159, %v89_v9  }
   0xb   :  { %37 = vperm.xlu0 %157, %v28_v10  }
   0xd   :  { %93 = vperm.xlu1 %158, %v88_v11  }
  0x12   :  { %103 = vperm.xlu2 %159, %v90_v12  }
  0x64   :  { %v99_v15 = vpop.permute.xlu2 %98 }
  0x6c   :  { %v104_v29 = vpop.permute.xlu2 %103 }
  0x75   :  { %v33_v13 = vpop.permute.xlu0 %32 }
  0x77   :  { %v43_v14 = vpop.permute.xlu1 %42 }
  0x7d   :  { %v38_v17 = vpop.permute.xlu0 %37 }
  0x7f   :  { %v94_v24 = vpop.permute.xlu1 %93 }
  0x84   :  { %v76_v16 = vpop.f32.mrf.mxu0 }
  0x85   :  { %v77_v18 = vadd.f32 %v76_v16, %v33_v13  ;;  %v79_v19 = vpop.f32.mrf.mxu1 }
  0x86   :  { %v80_v20 = vadd.f32 %v79_v19, %v38_v17 }
  0x87   :  { %v85_v21 = vmax.f32 %v77_v18, 0.0 }
  0x88   :  { %v86_v22 = vmax.f32 %v80_v20, 0.0 }
  0x89   :  { %v106_v27 = vmul.f32 %v94_v24, %v85_v21 }
  0x8a   :  { %v107_v26 = vmul.f32 %v99_v15, %v86_v22 }
  0x8b   :  { %v82_v23 = vpop.f32.mrf.mxu2 }
  0x8c   :  { %v83_v25 = vadd.f32 %v82_v23, %v43_v14  ;;  %v109_v31 = vadd.f32 %v107_v26, %v106_v27 }
  0x8e   :  { %v87_v28 = vmax.f32 %v83_v25, 0.0 }
  0x90   :  { %v108_v30 = vmul.f32 %v104_v29, %v87_v28 }
  0x92   :  { %v110_v32 = vsel %vm55_vm0, %v108_v30, 0.0 }
  0x93   :  { %v111_v33 = vadd.f32 %v110_v32, %v109_v31 }
  0x95   :  { %v112_v34 = vrot.slane %v111_v33, 4 }
  0x97   :  { %v113_v35 = vadd.f32 %v112_v34, %v111_v33 }
  0x99   :  { %v114_v36 = vrot.slane %v113_v35, 2 }
  0x9b   :  { %v115_v37 = vadd.f32 %v114_v36, %v113_v35 }
  0x9d   :  { %v116_v38 = vrot.slane %v115_v37, 1 }
  0x9f   :  { %v117_v40 = vadd.f32 %v116_v38, %v115_v37 }
  0xa1   :  { %v120_v41 = vadd.f32 %v119_v39, %v117_v40 }
  0xa3   :  { %v149_v42 = vmul.f32 -1.442695, %v120_v41 }
  0xa5   :  { %160 = vpow2.f32 %v149_v42 }
  0xab   :  { %v161_v43 = vpop.eup %160 }
  0xac   :  { %v124_v44 = vadd.f32 1.0, %v161_v43 }
  0xae   :  { %162 = vrcp.f32 %v124_v44  ;;  %v136_v48 = vand.u32 2147483648, %v124_v44  ;;  %v134_v50 = vand.u32 2147483647, %v124_v44  ;;  %vm130_vm3 = vweird.f32 %v124_v44 }
  0xb0   :  { %v137_v52 = vor.u32 1.1754944e-38, %v136_v48  ;;  %vm135_vm5 = vcmp.eq.f32.partialorder %v134_v50, 8.507059e+37 }
  0xb4   :  { %v163_v45 = vpop.eup %162 }
  0xb5   :  { %v126_v46 = vmul.f32 %v163_v45, %v124_v44  ;;  %vm131_vm2 = vweird.f32 %v163_v45 }
  0xb6   :  { %vm132_vm4 = vmor %vm130_vm3, %vm131_vm2 }
  0xb7   :  { %v127_v47 = vsub.f32 1.0, %v126_v46 }
  0xb9   :  { %v128_v49 = vmul.f32 %v163_v45, %v127_v47 }
  0xbb   :  { %v129_v51 = vadd.f32 %v163_v45, %v128_v49 }
  0xbd   :  { %v133_v53 = vsel %vm132_vm4, %v163_v45, %v129_v51 }
  0xbe   :  { %v138_v54 = vsel %vm135_vm5, %v137_v52, %v133_v53 }
  0xbf   :  { %140 = vst [vmem:[%s246_s5] sm:$0x1] %v138_v54 }

</bundles_post_ra>
